<compile_context>
chip_gen: v6e
topology: v6e:2x2x1
jax: 0.10.0
libtpu: 0.0.40
codegen_flags: <defaults>
</compile_context>

<pallas_src>
import functools

import jax
import jax.numpy as jnp
from jax import lax
from jax.experimental import pallas as pl
from jax.experimental.pallas import tpu as pltpu


def _cross_attn_kernel(q_ref, kv_ref,
                       wq_ref, bq_ref,
                       wkv_ref, bkv_ref,
                       wp_ref, bp_ref,
                       o_ref,
                       kv_sc,
                       *, num_heads, compute_dtype):
    cdt = compute_dtype
    C = q_ref.shape[-1]
    head_dim = C // num_heads

    # K/V projection is identical for every L-tile of the same batch element:
    # compute it only on the first tile and cache the result (bias already
    # added, stored in the compute dtype) in VMEM scratch.
    @pl.when(pl.program_id(1) == 0)
    def _():
        kv_in = kv_ref[0].astype(cdt)                              # (N, C)
        kvp = jnp.dot(kv_in, wkv_ref[...].astype(cdt),
                      preferred_element_type=jnp.float32) + bkv_ref[...]
        kv_sc[...] = kvp.astype(kv_sc.dtype)                       # (N, 2C)

    # Query projection for the current (batch, L-tile) block.
    q_in = q_ref[0].astype(cdt)                                    # (tL, C)
    q = jnp.dot(q_in, wq_ref[...].astype(cdt),
                preferred_element_type=jnp.float32) + bq_ref[...]  # scale folded
    q = q.astype(cdt)                                              # (tL, C)

    kv = kv_sc[...]                                                # (N, 2C) cdt
    k = kv[:, :C]                                                  # (N, C)
    v = kv[:, C:]                                                  # (N, C)
    wp = wp_ref[...].astype(cdt)                                   # (C, C)

    tL = q.shape[0]
    # Single f32 accumulator for the output projection (no lane-axis concat).
    acc = jnp.zeros((tL, C), jnp.float32)

    # num_heads is a static Python int -> loop unrolled at trace time.
    for h in range(num_heads):
        lo = h * head_dim
        hi = lo + head_dim
        qh = q[:, lo:hi]                                           # (tL, Dh)
        kh = k[:, lo:hi]                                           # (N,  Dh)
        vh = v[:, lo:hi]                                           # (N,  Dh)

        # Scores: contract last dims of q and k -> (tL, N), no explicit k^T.
        s = lax.dot_general(qh, kh, (((1,), (1,)), ((), ())),
                            preferred_element_type=jnp.float32)

        # Numerically-stable softmax (f32); normalization folded after p @ v.
        s_max = jnp.max(s, axis=-1, keepdims=True)
        p = jnp.exp(s - s_max)                                     # (tL, N)
        row_sum = jnp.sum(p, axis=-1, keepdims=True)               # (tL, 1)

        hv = jnp.dot(p.astype(cdt), vh,
                     preferred_element_type=jnp.float32)           # (tL, Dh)
        hv = hv * pl.reciprocal(row_sum)   # normalize the small matrix

        # Fold this head's output directly into the output projection via a
        # static sublane slice of wp.
        acc = acc + jnp.dot(hv.astype(cdt), wp[lo:hi, :],
                            preferred_element_type=jnp.float32)

    o_ref[0] = (acc + bp_ref[...]).astype(o_ref.dtype)


def prepare_kernel_params(params, *, num_heads, weight_dtype=jnp.float32):
    """One-time host-side parameter prep.

    Folds the attention scale into wq / bq, fuses the K and V projection
    weights into a single (C, 2C) matrix, and optionally stores the weight
    matrices in the compute dtype (bf16) to halve their HBM/VMEM footprint.
    Biases stay f32 (they are added to f32 accumulators).
    """
    C = params["wq"].shape[0]
    head_dim = C // num_heads
    scale = head_dim ** (-0.5)
    wkv = jnp.concatenate([params["wk"], params["wv"]], axis=1)   # (C, 2C)
    bkv = jnp.concatenate([params["bk"], params["bv"]], axis=1)   # (1, 2C)
    return {
        "wq": (params["wq"] * scale).astype(weight_dtype),
        "bq": (params["bq"] * scale).astype(jnp.float32),
        "wkv": wkv.astype(weight_dtype),
        "bkv": bkv.astype(jnp.float32),
        "wp": params["wp"].astype(weight_dtype),
        "bp": params["bp"].astype(jnp.float32),
    }


def cross_attention_pallas(q_in, kv_in, kparams, *, num_heads,
                           tile_l=None, compute_dtype=jnp.bfloat16,
                           vmem_limit_bytes=None):
    """Fused cross-attention forward.

    q_in : (B, L, C), kv_in : (B, N, C). Returns (B, L, C) in q_in.dtype.
    kparams: output of prepare_kernel_params().
    """
    B, L, C = q_in.shape
    _, N, _ = kv_in.shape
    assert C % num_heads == 0

    # L-tiling. On 128 MiB-VMEM parts (v5e/v6e) larger tiles (512-1024 rows)
    # push toward the HBM roofline; on v7x (64 MiB VMEM) use roughly half and
    # pass vmem_limit_bytes explicitly so blocks are sized for the part.
    if tile_l is None:
        tile_l = min(L, 256)
    while L % tile_l != 0:
        tile_l //= 2
    grid = (B, L // tile_l)

    kernel = functools.partial(_cross_attn_kernel,
                               num_heads=num_heads,
                               compute_dtype=compute_dtype)

    # Replicated (grid-invariant) blocks for weights/biases.
    rep = lambda arr: pl.BlockSpec(arr.shape, lambda b, l: (0, 0))

    grid_spec = pltpu.PrefetchScalarGridSpec(
        num_scalar_prefetch=0,
        grid=grid,
        in_specs=[
            pl.BlockSpec((1, tile_l, C), lambda b, l: (b, l, 0)),   # q tile
            pl.BlockSpec((1, N, C), lambda b, l: (b, 0, 0)),        # full K/V src
            rep(kparams["wq"]), rep(kparams["bq"]),
            rep(kparams["wkv"]), rep(kparams["bkv"]),
            rep(kparams["wp"]), rep(kparams["bp"]),
        ],
        out_specs=pl.BlockSpec((1, tile_l, C), lambda b, l: (b, l, 0)),
        # Persistent cache for the projected K|V of the current batch element.
        scratch_shapes=[pltpu.VMEM((N, 2 * C), compute_dtype)],
    )

    return pl.pallas_call(
        kernel,
        out_shape=jax.ShapeDtypeStruct((B, L, C), q_in.dtype),
        grid_spec=grid_spec,
        compiler_params=pltpu.CompilerParams(
            # L axis must run sequentially (innermost) so the KV scratch
            # computed at l == 0 is valid for the remaining tiles.
            dimension_semantics=("parallel", "arbitrary"),
            vmem_limit_bytes=vmem_limit_bytes),
    )(q_in, kv_in,
      kparams["wq"], kparams["bq"],
      kparams["wkv"], kparams["bkv"],
      kparams["wp"], kparams["bp"])


def cross_attention_ref(q_in, kv_in, params, *, num_heads):
    """Pure-JAX reference mirroring the PyTorch forward (dropout = identity)."""
    B, L, C = q_in.shape
    _, N, _ = kv_in.shape
    head_dim = C // num_heads
    scale = head_dim ** (-0.5)

    q = q_in @ params["wq"] + params["bq"]
    k = kv_in @ params["wk"] + params["bk"]
    v = kv_in @ params["wv"] + params["bv"]

    q = q.reshape(B, L, num_heads, head_dim).transpose(0, 2, 1, 3)
    k = k.reshape(B, N, num_heads, head_dim).transpose(0, 2, 1, 3)
    v = v.reshape(B, N, num_heads, head_dim).transpose(0, 2, 1, 3)

    attn = jnp.einsum("bhld,bhnd->bhln", q, k) * scale
    attn = jax.nn.softmax(attn, axis=-1)
    x = jnp.einsum("bhln,bhnd->bhld", attn, v)
    x = x.transpose(0, 2, 1, 3).reshape(B, L, C)
    return x @ params["wp"] + params["bp"]


def init_params(key, dim):
    """Deterministic synthetic parameters (shapes match the PyTorch module).

    nn.Linear(dim, 2*dim) ('kv') is split into its K and V halves; all weights
    are stored transposed as (in_features, out_features).
    """
    keys = jax.random.split(key, 8)
    s = 0.05
    # kv.weight is (2C, C) in PyTorch; first C rows -> k, last C rows -> v.
    wkv = jax.random.normal(keys[0], (2 * dim, dim), jnp.float32) * s
    bkv = jax.random.normal(keys[1], (2 * dim,), jnp.float32) * s
    wq = jax.random.normal(keys[2], (dim, dim), jnp.float32) * s
    bq = jax.random.normal(keys[3], (dim,), jnp.float32) * s
    wp = jax.random.normal(keys[4], (dim, dim), jnp.float32) * s
    bp = jax.random.normal(keys[5], (dim,), jnp.float32) * s
    return {
        "wq": wq.T, "bq": bq.reshape(1, dim),
        "wk": wkv[:dim].T, "bk": bkv[:dim].reshape(1, dim),
        "wv": wkv[dim:].T, "bv": bkv[dim:].reshape(1, dim),
        "wp": wp.T, "bp": bp.reshape(1, dim),
    }


if __name__ == "__main__":
    # Small demo shapes. NOTE: real SenFormer dims (C a multiple of 128) give
    # lane-dense blocks; at C=32 the demo is inherently lane-sparse.
    # L=16 with tile_l=8 -> 2 L-tiles per batch, exercising the cached-KV path.
    B, L, N, C = 2, 16, 16, 32
    num_heads = 4
    tile_l = 8

    key = jax.random.PRNGKey(0)
    k_q, k_kv, k_p = jax.random.split(key, 3)
    q_in = jax.random.normal(k_q, (B, L, C), jnp.float32)
    kv_in = jax.random.normal(k_kv, (B, N, C), jnp.float32)
    params = init_params(k_p, C)
    ref = cross_attention_ref(q_in, kv_in, params, num_heads=num_heads)

    # 1) f32 MXU path: tight check against the pure-JAX reference.
    kp_f32 = prepare_kernel_params(params, num_heads=num_heads,
                                   weight_dtype=jnp.float32)
    out_f32 = cross_attention_pallas(q_in, kv_in, kp_f32,
                                     num_heads=num_heads, tile_l=tile_l,
                                     compute_dtype=jnp.float32)
    out_f32 = jax.block_until_ready(out_f32)
    assert out_f32.shape == (B, L, C)
    err_f32 = float(jnp.max(jnp.abs(out_f32 - ref)))
    assert jnp.allclose(out_f32, ref, atol=1e-4, rtol=1e-4), (
        f"f32 path max abs err {err_f32}")

    # 2) bf16 MXU path (production default): looser tolerance vs f32 reference.
    kp_bf16 = prepare_kernel_params(params, num_heads=num_heads,
                                    weight_dtype=jnp.bfloat16)
    out_bf16 = cross_attention_pallas(q_in, kv_in, kp_bf16,
                                      num_heads=num_heads, tile_l=tile_l,
                                      compute_dtype=jnp.bfloat16)
    out_bf16 = jax.block_until_ready(out_bf16)
    err_bf16 = float(jnp.max(jnp.abs(out_bf16.astype(jnp.float32) - ref)))
    assert jnp.allclose(out_bf16.astype(jnp.float32), ref,
                        atol=3e-2, rtol=3e-2), (
        f"bf16 path max abs err {err_bf16}")

    print("KERNEL_OK")
</pallas_src>

<mosaic_0001>
module attributes {stable_mosaic.version = 11 : i64} {
  func.func @_cross_attn_kernel(%arg0: i32, %arg1: i32, %arg2: memref<1x8x32xf32, #tpu.memory_space<vmem>>, %arg3: memref<1x16x32xf32, #tpu.memory_space<vmem>>, %arg4: memref<32x32xf32, #tpu.memory_space<vmem>>, %arg5: memref<1x32xf32, #tpu.memory_space<vmem>>, %arg6: memref<32x64xf32, #tpu.memory_space<vmem>>, %arg7: memref<1x64xf32, #tpu.memory_space<vmem>>, %arg8: memref<32x32xf32, #tpu.memory_space<vmem>>, %arg9: memref<1x32xf32, #tpu.memory_space<vmem>>, %arg10: memref<1x8x32xf32, #tpu.memory_space<vmem>>, %arg11: memref<16x64xf32, #tpu.memory_space<vmem>>) attributes {dimension_semantics = [#tpu.dimension_semantics<parallel>, #tpu.dimension_semantics<arbitrary>], iteration_bounds = array<i64: 2, 2>, scalar_prefetch = 0 : i64, scratch_operands = 1 : i64, tpu.core_type = #tpu.core_type<tc>, window_params = [{transform_indices = @transform_0, window_bounds = array<i64: 1, 8, 32>}, {transform_indices = @transform_1, window_bounds = array<i64: 1, 16, 32>}, {pipeline_mode = #tpu.pipeline_mode<synchronous>, transform_indices = @transform_2, window_bounds = array<i64: 32, 32>}, {pipeline_mode = #tpu.pipeline_mode<synchronous>, transform_indices = @transform_3, window_bounds = array<i64: 1, 32>}, {pipeline_mode = #tpu.pipeline_mode<synchronous>, transform_indices = @transform_4, window_bounds = array<i64: 32, 64>}, {pipeline_mode = #tpu.pipeline_mode<synchronous>, transform_indices = @transform_5, window_bounds = array<i64: 1, 64>}, {pipeline_mode = #tpu.pipeline_mode<synchronous>, transform_indices = @transform_6, window_bounds = array<i64: 32, 32>}, {pipeline_mode = #tpu.pipeline_mode<synchronous>, transform_indices = @transform_7, window_bounds = array<i64: 1, 32>}, {transform_indices = @transform_8, window_bounds = array<i64: 1, 8, 32>}]} {
    %c0_i32 = arith.constant 0 : i32
    %0 = arith.cmpi eq, %arg1, %c0_i32 : i32
    %1 = arith.extui %0 : i1 to i32
    %c0_i32_0 = arith.constant 0 : i32
    %2 = arith.cmpi ne, %1, %c0_i32_0 : i32
    scf.if %2 {
      %c0_37 = arith.constant 0 : index
      %c0_38 = arith.constant 0 : index
      %c0_39 = arith.constant 0 : index
      %93 = vector.load %arg3[%c0_37, %c0_38, %c0_39] : memref<1x16x32xf32, #tpu.memory_space<vmem>>, vector<1x16x32xf32>
      %94 = vector.shape_cast %93 : vector<1x16x32xf32> to vector<16x32xf32>
      %c0_40 = arith.constant 0 : index
      %c0_41 = arith.constant 0 : index
      %95 = vector.load %arg6[%c0_40, %c0_41] : memref<32x64xf32, #tpu.memory_space<vmem>>, vector<32x64xf32>
      %cst_42 = arith.constant dense<0.000000e+00> : vector<16x64xf32>
      %96 = tpu.matmul %94, %95, %cst_42 {dimension_numbers = #tpu.dot_dimension_numbers<[1], [0], [0], [1], [0, 0, 1, 1], [], []>} : vector<16x32xf32>, vector<32x64xf32>, vector<16x64xf32> -> vector<16x64xf32>
      %c0_43 = arith.constant 0 : index
      %c0_44 = arith.constant 0 : index
      %97 = vector.load %arg7[%c0_43, %c0_44] : memref<1x64xf32, #tpu.memory_space<vmem>>, vector<1x64xf32>
      %98 = vector.broadcast %97 : vector<1x64xf32> to vector<16x64xf32>
      %99 = arith.addf %96, %98 : vector<16x64xf32>
      %c0_45 = arith.constant 0 : index
      %c0_46 = arith.constant 0 : index
      %100 = vector.load %arg11[%c0_45, %c0_46] : memref<16x64xf32, #tpu.memory_space<vmem>>, vector<16x64xf32>
      tpu.vector_store %arg11[%c0_45, %c0_46], %99 {strides = array<i32>} : memref<16x64xf32, #tpu.memory_space<vmem>>, vector<16x64xf32>,
    } else {
    }
    %c0 = arith.constant 0 : index
    %c0_1 = arith.constant 0 : index
    %c0_2 = arith.constant 0 : index
    %3 = vector.load %arg2[%c0, %c0_1, %c0_2] : memref<1x8x32xf32, #tpu.memory_space<vmem>>, vector<1x8x32xf32>
    %4 = vector.shape_cast %3 : vector<1x8x32xf32> to vector<8x32xf32>
    %c0_3 = arith.constant 0 : index
    %c0_4 = arith.constant 0 : index
    %5 = vector.load %arg4[%c0_3, %c0_4] : memref<32x32xf32, #tpu.memory_space<vmem>>, vector<32x32xf32>
    %cst = arith.constant dense<0.000000e+00> : vector<8x32xf32>
    %6 = tpu.matmul %4, %5, %cst {dimension_numbers = #tpu.dot_dimension_numbers<[1], [0], [0], [1], [0, 0, 1, 1], [], []>} : vector<8x32xf32>, vector<32x32xf32>, vector<8x32xf32> -> vector<8x32xf32>
    %c0_5 = arith.constant 0 : index
    %c0_6 = arith.constant 0 : index
    %7 = vector.load %arg5[%c0_5, %c0_6] : memref<1x32xf32, #tpu.memory_space<vmem>>, vector<1x32xf32>
    %8 = vector.broadcast %7 : vector<1x32xf32> to vector<8x32xf32>
    %9 = arith.addf %6, %8 : vector<8x32xf32>
    %c0_7 = arith.constant 0 : index
    %c0_8 = arith.constant 0 : index
    %10 = vector.load %arg11[%c0_7, %c0_8] : memref<16x64xf32, #tpu.memory_space<vmem>>, vector<16x64xf32>
    %11 = vector.extract_strided_slice %10 {offsets = [0, 0], sizes = [16, 32], strides = [1, 1]} : vector<16x64xf32> to vector<16x32xf32>
    %12 = vector.extract_strided_slice %10 {offsets = [0, 32], sizes = [16, 32], strides = [1, 1]} : vector<16x64xf32> to vector<16x32xf32>
    %c0_9 = arith.constant 0 : index
    %c0_10 = arith.constant 0 : index
    %13 = vector.load %arg8[%c0_9, %c0_10] : memref<32x32xf32, #tpu.memory_space<vmem>>, vector<32x32xf32>
    %cst_11 = arith.constant 0.000000e+00 : f32
    %14 = vector.broadcast %cst_11 : f32 to vector<8x32xf32>
    %15 = vector.extract_strided_slice %9 {offsets = [0, 0], sizes = [8, 8], strides = [1, 1]} : vector<8x32xf32> to vector<8x8xf32>
    %16 = vector.extract_strided_slice %11 {offsets = [0, 0], sizes = [16, 8], strides = [1, 1]} : vector<16x32xf32> to vector<16x8xf32>
    %17 = vector.extract_strided_slice %12 {offsets = [0, 0], sizes = [16, 8], strides = [1, 1]} : vector<16x32xf32> to vector<16x8xf32>
    %cst_12 = arith.constant dense<0.000000e+00> : vector<8x16xf32>
    %18 = tpu.matmul %15, %16, %cst_12 {dimension_numbers = #tpu.dot_dimension_numbers<[1], [1], [0], [0], [0, 0, 1, 0], [], []>} : vector<8x8xf32>, vector<16x8xf32>, vector<8x16xf32> -> vector<8x16xf32>
    %cst_13 = arith.constant dense<0xFF800000> : vector<8xf32>
    %19 = vector.multi_reduction <maximumf>, %18, %cst_13 [1] : vector<8x16xf32> to vector<8xf32>
    %20 = vector.shape_cast %19 : vector<8xf32> to vector<8x1xf32>
    %21 = vector.broadcast %20 : vector<8x1xf32> to vector<8x16xf32>
    %22 = arith.subf %18, %21 : vector<8x16xf32>
    %23 = math.exp %22 : vector<8x16xf32>
    %cst_14 = arith.constant dense<0.000000e+00> : vector<8xf32>
    %24 = vector.multi_reduction <add>, %23, %cst_14 [1] : vector<8x16xf32> to vector<8xf32>
    %25 = vector.shape_cast %24 : vector<8xf32> to vector<8x1xf32>
    %cst_15 = arith.constant dense<0.000000e+00> : vector<8x8xf32>
    %26 = tpu.matmul %23, %17, %cst_15 {dimension_numbers = #tpu.dot_dimension_numbers<[1], [0], [0], [1], [0, 0, 1, 1], [], []>} : vector<8x16xf32>, vector<16x8xf32>, vector<8x8xf32> -> vector<8x8xf32>
    %27 = tpu.reciprocal %25 : vector<8x1xf32> -> vector<8x1xf32>
    %28 = vector.broadcast %27 : vector<8x1xf32> to vector<8x8xf32>
    %29 = arith.mulf %26, %28 : vector<8x8xf32>
    %30 = vector.extract_strided_slice %13 {offsets = [0, 0], sizes = [8, 32], strides = [1, 1]} : vector<32x32xf32> to vector<8x32xf32>
    %cst_16 = arith.constant dense<0.000000e+00> : vector<8x32xf32>
    %31 = tpu.matmul %29, %30, %cst_16 {dimension_numbers = #tpu.dot_dimension_numbers<[1], [0], [0], [1], [0, 0, 1, 1], [], []>} : vector<8x8xf32>, vector<8x32xf32>, vector<8x32xf32> -> vector<8x32xf32>
    %32 = arith.addf %14, %31 : vector<8x32xf32>
    %33 = vector.extract_strided_slice %9 {offsets = [0, 8], sizes = [8, 8], strides = [1, 1]} : vector<8x32xf32> to vector<8x8xf32>
    %34 = vector.extract_strided_slice %11 {offsets = [0, 8], sizes = [16, 8], strides = [1, 1]} : vector<16x32xf32> to vector<16x8xf32>
    %35 = vector.extract_strided_slice %12 {offsets = [0, 8], sizes = [16, 8], strides = [1, 1]} : vector<16x32xf32> to vector<16x8xf32>
    %cst_17 = arith.constant dense<0.000000e+00> : vector<8x16xf32>
    %36 = tpu.matmul %33, %34, %cst_17 {dimension_numbers = #tpu.dot_dimension_numbers<[1], [1], [0], [0], [0, 0, 1, 0], [], []>} : vector<8x8xf32>, vector<16x8xf32>, vector<8x16xf32> -> vector<8x16xf32>
    %cst_18 = arith.constant dense<0xFF800000> : vector<8xf32>
    %37 = vector.multi_reduction <maximumf>, %36, %cst_18 [1] : vector<8x16xf32> to vector<8xf32>
    %38 = vector.shape_cast %37 : vector<8xf32> to vector<8x1xf32>
    %39 = vector.broadcast %38 : vector<8x1xf32> to vector<8x16xf32>
    %40 = arith.subf %36, %39 : vector<8x16xf32>
    %41 = math.exp %40 : vector<8x16xf32>
    %cst_19 = arith.constant dense<0.000000e+00> : vector<8xf32>
    %42 = vector.multi_reduction <add>, %41, %cst_19 [1] : vector<8x16xf32> to vector<8xf32>
    %43 = vector.shape_cast %42 : vector<8xf32> to vector<8x1xf32>
    %cst_20 = arith.constant dense<0.000000e+00> : vector<8x8xf32>
    %44 = tpu.matmul %41, %35, %cst_20 {dimension_numbers = #tpu.dot_dimension_numbers<[1], [0], [0], [1], [0, 0, 1, 1], [], []>} : vector<8x16xf32>, vector<16x8xf32>, vector<8x8xf32> -> vector<8x8xf32>
    %45 = tpu.reciprocal %43 : vector<8x1xf32> -> vector<8x1xf32>
    %46 = vector.broadcast %45 : vector<8x1xf32> to vector<8x8xf32>
    %47 = arith.mulf %44, %46 : vector<8x8xf32>
    %48 = vector.extract_strided_slice %13 {offsets = [8, 0], sizes = [8, 32], strides = [1, 1]} : vector<32x32xf32> to vector<8x32xf32>
    %cst_21 = arith.constant dense<0.000000e+00> : vector<8x32xf32>
    %49 = tpu.matmul %47, %48, %cst_21 {dimension_numbers = #tpu.dot_dimension_numbers<[1], [0], [0], [1], [0, 0, 1, 1], [], []>} : vector<8x8xf32>, vector<8x32xf32>, vector<8x32xf32> -> vector<8x32xf32>
    %50 = arith.addf %32, %49 : vector<8x32xf32>
    %51 = vector.extract_strided_slice %9 {offsets = [0, 16], sizes = [8, 8], strides = [1, 1]} : vector<8x32xf32> to vector<8x8xf32>
    %52 = vector.extract_strided_slice %11 {offsets = [0, 16], sizes = [16, 8], strides = [1, 1]} : vector<16x32xf32> to vector<16x8xf32>
    %53 = vector.extract_strided_slice %12 {offsets = [0, 16], sizes = [16, 8], strides = [1, 1]} : vector<16x32xf32> to vector<16x8xf32>
    %cst_22 = arith.constant dense<0.000000e+00> : vector<8x16xf32>
    %54 = tpu.matmul %51, %52, %cst_22 {dimension_numbers = #tpu.dot_dimension_numbers<[1], [1], [0], [0], [0, 0, 1, 0], [], []>} : vector<8x8xf32>, vector<16x8xf32>, vector<8x16xf32> -> vector<8x16xf32>
    %cst_23 = arith.constant dense<0xFF800000> : vector<8xf32>
    %55 = vector.multi_reduction <maximumf>, %54, %cst_23 [1] : vector<8x16xf32> to vector<8xf32>
    %56 = vector.shape_cast %55 : vector<8xf32> to vector<8x1xf32>
    %57 = vector.broadcast %56 : vector<8x1xf32> to vector<8x16xf32>
    %58 = arith.subf %54, %57 : vector<8x16xf32>
    %59 = math.exp %58 : vector<8x16xf32>
    %cst_24 = arith.constant dense<0.000000e+00> : vector<8xf32>
    %60 = vector.multi_reduction <add>, %59, %cst_24 [1] : vector<8x16xf32> to vector<8xf32>
    %61 = vector.shape_cast %60 : vector<8xf32> to vector<8x1xf32>
    %cst_25 = arith.constant dense<0.000000e+00> : vector<8x8xf32>
    %62 = tpu.matmul %59, %53, %cst_25 {dimension_numbers = #tpu.dot_dimension_numbers<[1], [0], [0], [1], [0, 0, 1, 1], [], []>} : vector<8x16xf32>, vector<16x8xf32>, vector<8x8xf32> -> vector<8x8xf32>
    %63 = tpu.reciprocal %61 : vector<8x1xf32> -> vector<8x1xf32>
    %64 = vector.broadcast %63 : vector<8x1xf32> to vector<8x8xf32>
    %65 = arith.mulf %62, %64 : vector<8x8xf32>
    %66 = vector.extract_strided_slice %13 {offsets = [16, 0], sizes = [8, 32], strides = [1, 1]} : vector<32x32xf32> to vector<8x32xf32>
    %cst_26 = arith.constant dense<0.000000e+00> : vector<8x32xf32>
    %67 = tpu.matmul %65, %66, %cst_26 {dimension_numbers = #tpu.dot_dimension_numbers<[1], [0], [0], [1], [0, 0, 1, 1], [], []>} : vector<8x8xf32>, vector<8x32xf32>, vector<8x32xf32> -> vector<8x32xf32>
    %68 = arith.addf %50, %67 : vector<8x32xf32>
    %69 = vector.extract_strided_slice %9 {offsets = [0, 24], sizes = [8, 8], strides = [1, 1]} : vector<8x32xf32> to vector<8x8xf32>
    %70 = vector.extract_strided_slice %11 {offsets = [0, 24], sizes = [16, 8], strides = [1, 1]} : vector<16x32xf32> to vector<16x8xf32>
    %71 = vector.extract_strided_slice %12 {offsets = [0, 24], sizes = [16, 8], strides = [1, 1]} : vector<16x32xf32> to vector<16x8xf32>
    %cst_27 = arith.constant dense<0.000000e+00> : vector<8x16xf32>
    %72 = tpu.matmul %69, %70, %cst_27 {dimension_numbers = #tpu.dot_dimension_numbers<[1], [1], [0], [0], [0, 0, 1, 0], [], []>} : vector<8x8xf32>, vector<16x8xf32>, vector<8x16xf32> -> vector<8x16xf32>
    %cst_28 = arith.constant dense<0xFF800000> : vector<8xf32>
    %73 = vector.multi_reduction <maximumf>, %72, %cst_28 [1] : vector<8x16xf32> to vector<8xf32>
    %74 = vector.shape_cast %73 : vector<8xf32> to vector<8x1xf32>
    %75 = vector.broadcast %74 : vector<8x1xf32> to vector<8x16xf32>
    %76 = arith.subf %72, %75 : vector<8x16xf32>
    %77 = math.exp %76 : vector<8x16xf32>
    %cst_29 = arith.constant dense<0.000000e+00> : vector<8xf32>
    %78 = vector.multi_reduction <add>, %77, %cst_29 [1] : vector<8x16xf32> to vector<8xf32>
    %79 = vector.shape_cast %78 : vector<8xf32> to vector<8x1xf32>
    %cst_30 = arith.constant dense<0.000000e+00> : vector<8x8xf32>
    %80 = tpu.matmul %77, %71, %cst_30 {dimension_numbers = #tpu.dot_dimension_numbers<[1], [0], [0], [1], [0, 0, 1, 1], [], []>} : vector<8x16xf32>, vector<16x8xf32>, vector<8x8xf32> -> vector<8x8xf32>
    %81 = tpu.reciprocal %79 : vector<8x1xf32> -> vector<8x1xf32>
    %82 = vector.broadcast %81 : vector<8x1xf32> to vector<8x8xf32>
    %83 = arith.mulf %80, %82 : vector<8x8xf32>
    %84 = vector.extract_strided_slice %13 {offsets = [24, 0], sizes = [8, 32], strides = [1, 1]} : vector<32x32xf32> to vector<8x32xf32>
    %cst_31 = arith.constant dense<0.000000e+00> : vector<8x32xf32>
    %85 = tpu.matmul %83, %84, %cst_31 {dimension_numbers = #tpu.dot_dimension_numbers<[1], [0], [0], [1], [0, 0, 1, 1], [], []>} : vector<8x8xf32>, vector<8x32xf32>, vector<8x32xf32> -> vector<8x32xf32>
    %86 = arith.addf %68, %85 : vector<8x32xf32>
    %c0_32 = arith.constant 0 : index
    %c0_33 = arith.constant 0 : index
    %87 = vector.load %arg9[%c0_32, %c0_33] : memref<1x32xf32, #tpu.memory_space<vmem>>, vector<1x32xf32>
    %88 = vector.broadcast %87 : vector<1x32xf32> to vector<8x32xf32>
    %89 = arith.addf %86, %88 : vector<8x32xf32>
    %c0_34 = arith.constant 0 : index
    %c0_35 = arith.constant 0 : index
    %c0_36 = arith.constant 0 : index
    %90 = vector.load %arg10[%c0_34, %c0_35, %c0_36] : memref<1x8x32xf32, #tpu.memory_space<vmem>>, vector<1x8x32xf32>
    %91 = vector.shape_cast %90 : vector<1x8x32xf32> to vector<8x32xf32>
    %92 = vector.shape_cast %89 : vector<8x32xf32> to vector<1x8x32xf32>
    tpu.vector_store %arg10[%c0_34, %c0_35, %c0_36], %92 {strides = array<i32>} : memref<1x8x32xf32, #tpu.memory_space<vmem>>, vector<1x8x32xf32>,
    return
  }
  func.func @transform_0(%arg0: i32, %arg1: i32) -> (i32, i32, i32) {
    %c0_i32 = arith.constant 0 : i32
    %c0_i32_0 = arith.constant 0 : i32
    return %arg0, %arg1, %c0_i32 : i32, i32, i32
  }
  func.func @transform_1(%arg0: i32, %arg1: i32) -> (i32, i32, i32) {
    %c0_i32 = arith.constant 0 : i32
    %c0_i32_0 = arith.constant 0 : i32
    %c0_i32_1 = arith.constant 0 : i32
    return %arg0, %c0_i32, %c0_i32_0 : i32, i32, i32
  }
  func.func @transform_2(%arg0: i32, %arg1: i32) -> (i32, i32) {
    %c0_i32 = arith.constant 0 : i32
    %c0_i32_0 = arith.constant 0 : i32
    %c0_i32_1 = arith.constant 0 : i32
    return %c0_i32, %c0_i32_0 : i32, i32
  }
  func.func @transform_3(%arg0: i32, %arg1: i32) -> (i32, i32) {
    %c0_i32 = arith.constant 0 : i32
    %c0_i32_0 = arith.constant 0 : i32
    %c0_i32_1 = arith.constant 0 : i32
    return %c0_i32, %c0_i32_0 : i32, i32
  }
  func.func @transform_4(%arg0: i32, %arg1: i32) -> (i32, i32) {
    %c0_i32 = arith.constant 0 : i32
    %c0_i32_0 = arith.constant 0 : i32
    %c0_i32_1 = arith.constant 0 : i32
    return %c0_i32, %c0_i32_0 : i32, i32
  }
  func.func @transform_5(%arg0: i32, %arg1: i32) -> (i32, i32) {
    %c0_i32 = arith.constant 0 : i32
    %c0_i32_0 = arith.constant 0 : i32
    %c0_i32_1 = arith.constant 0 : i32
    return %c0_i32, %c0_i32_0 : i32, i32
  }
  func.func @transform_6(%arg0: i32, %arg1: i32) -> (i32, i32) {
    %c0_i32 = arith.constant 0 : i32
    %c0_i32_0 = arith.constant 0 : i32
    %c0_i32_1 = arith.constant 0 : i32
    return %c0_i32, %c0_i32_0 : i32, i32
  }
  func.func @transform_7(%arg0: i32, %arg1: i32) -> (i32, i32) {
    %c0_i32 = arith.constant 0 : i32
    %c0_i32_0 = arith.constant 0 : i32
    %c0_i32_1 = arith.constant 0 : i32
    return %c0_i32, %c0_i32_0 : i32, i32
  }
  func.func @transform_8(%arg0: i32, %arg1: i32) -> (i32, i32, i32) {
    %c0_i32 = arith.constant 0 : i32
    %c0_i32_0 = arith.constant 0 : i32
    return %arg0, %arg1, %c0_i32 : i32, i32, i32
  }
}

</mosaic_0001>

<bundles_post_ra>
// kernel: tpu_custom_call.1
= control target key start
LH: loop header
LB: loop body
LE: loop exit
PB: predicated region body
PF: predicated region fallthrough
CT: control target
= control target key end

     0   :  { %s2857_s0 = inlined_call_operand.hbm [shape: f32[2,16,32], index: 0, kind: input, shape index: {}]   ;;  %s2858_s1 = inlined_call_operand.hbm [shape: f32[2,16,32], index: 1, kind: input, shape index: {}]   ;;  %s2859_s2 = inlined_call_operand.hbm [shape: f32[32,32], index: 2, kind: input, shape index: {}]   ;;  %s2860_s3 = inlined_call_operand.vmem [shape: f32[1,32], index: 3, kind: input, shape index: {}]   ;;  %s2861_s4 = inlined_call_operand.hbm [shape: f32[32,64], index: 4, kind: input, shape index: {}]   ;;  %s2862_s5 = inlined_call_operand.vmem [shape: f32[1,64], index: 5, kind: input, shape index: {}]   ;;  %s2863_s6 = inlined_call_operand.hbm [shape: f32[32,32], index: 6, kind: input, shape index: {}]   ;;  %s2864_s7 = inlined_call_operand.vmem [shape: f32[1,32], index: 7, kind: input, shape index: {}]   ;;  %s2865_s8 = inlined_call_operand.hbm [shape: f32[2,16,32], index: 8, kind: output, shape index: {}]  }
   0x1   :  { %2877 = sst [smem:[#allocation25_spill]] %s2857_s0 }
   0x2   :  { %2878 = sst [smem:[#allocation26_spill]] %s2859_s2 }
   0x3   :  { %2879 = sst [smem:[#allocation27_spill]] %s2860_s3 }
   0x4   :  { %2880 = sst [smem:[#allocation28_spill]] %s2861_s4 }
   0x5   :  { %2881 = sst [smem:[#allocation29_spill]] %s2862_s5 }
   0x6   :  { %2882 = sst [smem:[#allocation30_spill]] %s2863_s6 }
   0x7   :  { %2883 = sst [smem:[#allocation31_spill]] %s2864_s7 }
   0x8   :  { %2884 = sst [smem:[#allocation32_spill]] %s2865_s8 }
   0x9   :  { %13 = vsyncpa [#allocation4], 0 }
   0xa   :  { %15 = vsyncpa [#allocation4 + $0x1], 0 }
   0xb   :  { %16 = vsyncpa [#allocation7], 0 }
   0xc   :  { %18 = vsyncpa [#allocation7 + $0x1], 0 }
   0xd   :  { %19 = vsyncpa [#allocation10], 0 }
   0xe   :  { %20 = vsyncpa [#allocation5], 0 }
   0xf   :  { %22 = vsyncpa [#allocation5 + $0x1], 0  ;;  %s2447_s27 = smov 0   ;;  %s2449_s28 = smov 0  }
  0x10   :  { %s2451_s29 = smov 0   ;;  %s2453_s30 = smov 0  }
  0x11   :  { %s2455_s9 = smov 0   ;;  %s2457_s10 = smov 0  }
  0x12   :  { %s2459_s11 = smov 0   ;;  %s2461_s12 = smov 0  }
  0x13   :  { %s2463_s13 = smov 0   ;;  %s2465_s14 = smov 0  }
  0x14   :  { %s2467_s15 = smov 0  }
  0x15 LB: > { %2885 = sst [smem:[#allocation18_spill]] %s2371_s12  ;;  %s2501_s16 = sadd.s32 4294967295, %s2383_s15   ;;  %s2383_s15 = sphi %s2467_s15, %s28_s15   ;;  %s2379_s14 = sphi %s2465_s14, %s2933_s14   ;;  %s2375_s13 = sphi %s2463_s13, %s2924_s13   ;;  %s2371_s12 = sphi %s2461_s12, %s2932_s12   ;;  %s2367_s11 = sphi %s2459_s11, %s2923_s11   ;;  %s2363_s10 = sphi %s2457_s10, %s2931_s10   ;;  %s2359_s9 = sphi %s2455_s9, %s2930_s9   ;;  %s2355_s30 = sphi %s2453_s30, %s2929_s30   ;;  %s2351_s29 = sphi %s2451_s29, %s2928_s29   ;;  %s2347_s28 = sphi %s2449_s28, %s2927_s28   ;;  %s2343_s27 = sphi %s2447_s27, %s2926_s27  }
  0x16   : > { %2886 = sst [smem:[#allocation19_spill]] %s2375_s13  ;;  %p88_p0 = scmp.ne.s32.totalorder %s2347_s28, %s2343_s27 }
  0x17   : > { %p2871_p1 = scmp.eq.s32.totalorder %s2501_s16, 0  ;;  %p1760_p2 = scmp.ge.s32.totalorder %s2383_s15, 1 }
  0x18   : > { %p253_p3 = scmp.lt.s32.totalorder %s2383_s15, 5  ;;  %s2385_s19 = smov [#allocation8]  }
  0x19   : > { %p2509_p4 = por %p88_p0, %p2871_p1  ;;  %s265_s20 = sshll.u32 %s2385_s19, 4  ;;  %s266_s20 = int_to_ptr.vmem [resolvable:$true] %s265_s20 }
  0x1a   : > { %p2513_p5 = pnand %p1760_p2, %p253_p3  ;;  %s2386_s22 = smov [#allocation9]  }
  0x1b   : > { %s2887_s17 = scalar_select %p2509_p4, 1, 0 }
  0x1c   : > { %p1970_p6 = pneg %p2513_p5  ;;  %s281_s23 = sshll.u32 %s2386_s22, 4  ;;  %s282_s23 = int_to_ptr.vmem [resolvable:$true] %s281_s23 }
  0x1d   : > { %s2387_s24 = smov [#allocation11]   ;;  %s2128_s26 = scalar_lea.vmem %s266_s20, 512 }
  0x1e   : > { %p2521_p7 = pnand %p1970_p6, %p2871_p1  ;;  %s297_s25 = sshll.u32 %s2387_s24, 4  ;;  %s298_s25 = int_to_ptr.vmem [resolvable:$true] %s297_s25 }
  0x1f   : > { %p2129_p9 = scmp.ne.s32.totalorder %s266_s20, %s2128_s26  ;;  %p2136_p12 = scmp.lt.s32.totalorder %s266_s20, %s266_s20 }
  0x20   : > { %p2119_p8 = pneg %p2521_p7  ;;  %p2137_p13 = scmp.lt.s32.totalorder %s2128_s26, %s2128_s26 }
  0x22   : > { %p2131_p10 = pnand %p2129_p9, %p2119_p8  ;;  %p2138_p0 = por %p2137_p13, %p2136_p12 }
  0x24   : > { %p2132_p11 = pneg %p2131_p10 }
  0x26   : > { %p2139_p2 = pnand %p2138_p0, %p2132_p11 }
  0x28   : > { %2142 = shalt.err (!%p2139_p2)
}
  0x29   : > { %s2867_s27 = smov 128   ;;  %s2868_s19 = smov 8  }
  0x2a   : > { %s2890_s2 = sld [smem:[#allocation26_spill]]  ;;  %s2154_s8 = scalar_lea.vmem %s282_s23, 512 }
  0x2b   : > { %p2155_p3 = scmp.ne.s32.totalorder %s282_s23, %s2154_s8  ;;  %p2162_p10 = scmp.lt.s32.totalorder %s282_s23, %s282_s23 }
  0x2c   : > { %p2163_p11 = scmp.lt.s32.totalorder %s2154_s8, %s2154_s8 }
  0x2d   : > { %p2157_p6 = pnand %p2155_p3, %p2119_p8 }
  0x2e   : > { %p2164_p12 = por %p2163_p11, %p2162_p10 }
  0x2f   : > { %p2158_p9 = pneg %p2157_p6 }
  0x30   : > { %1973 = dma.hbm_to_vmem [thread:$0]  (!%p2521_p7), %s2890_s2, 512, %s266_s20, [#allocation7], %s2867_s27, %s2867_s27, %s2868_s19  }
  0x31   : > { %p2165_p13 = pnand %p2164_p12, %p2158_p9 }
  0x33   : > { %2168 = shalt.err (!%p2165_p13)
}
  0x34   : > { %s2891_s4 = sld [smem:[#allocation28_spill]]  ;;  %s2180_s20 = scalar_lea.vmem %s298_s25, 512 }
  0x35   : > { %p2181_p0 = scmp.ne.s32.totalorder %s298_s25, %s2180_s20  ;;  %p2188_p6 = scmp.lt.s32.totalorder %s298_s25, %s298_s25 }
  0x36   : > { %p2189_p9 = scmp.lt.s32.totalorder %s2180_s20, %s2180_s20 }
  0x37   : > { %p2183_p2 = pnand %p2181_p0, %p2119_p8 }
  0x38   : > { %p2190_p10 = por %p2189_p9, %p2188_p6 }
  0x39   : > { %p2184_p3 = pneg %p2183_p2 }
  0x3a   : > { %1976 = dma.hbm_to_vmem [thread:$0]  (!%p2521_p7), %s2891_s4, 512, %s282_s23, [#allocation10], %s2867_s27, %s2867_s27, %s2868_s19  }
  0x3b   : > { %p2191_p11 = pnand %p2190_p10, %p2184_p3 }
  0x3d   : > { %2194 = shalt.err (!%p2191_p11)
}
  0x3e   : > { %s2892_s6 = sld [smem:[#allocation30_spill]]  ;;  %s1759_s21 = sadd.s32 4294967294, %s2383_s15  }
  0x3f   : > { %s37_s23 = sadd.s32 1, %s2375_s13  ;;  %s40_s22 = sadd.s32 1, %s2379_s14 }
  0x40   : > { %p38_p8 = scmp.ge.s32.totalorder %s37_s23, 2  ;;  %s49_s24 = sadd.s32 1, %s2363_s10 }
  0x41   : > { %p56_p12 = scmp.ne.s32.totalorder %s2363_s10, %s2359_s9  ;;  %p57_p13 = scmp.eq.s32.totalorder %s2383_s15, 0 }
  0x42   : > { %s2935_s23 = smov (%p38_p8, %s37_s23), 0  ;;  %s2937_s22 = smov (!%p38_p8, %s40_s22), %s2379_s14 }
  0x43   : > { %2893 = sst [smem:[#allocation20_spill]] %s2935_s23  ;;  %p42_p0 = scmp.ge.s32.totalorder %s2937_s22, 2 }
  0x44   : > { %1979 = dma.hbm_to_vmem [thread:$0]  (!%p2521_p7), %s2892_s6, 512, %s298_s25, [#allocation10], %s2867_s27, %s2867_s27, %s2868_s19  }
  0x45   : > { %s45_s25 = ssub.s32 %s2375_s13, %s2935_s23  ;;  %p2575_p7 = por %p57_p13, %p56_p12 }
  0x46   : > { %p62_p2 = scmp.ne.s32.totalorder %s2359_s9, %s2355_s30  ;;  %s75_s20 = sadd.s32 1, %s2351_s29 }
  0x47   : > { %p82_p3 = scmp.ne.s32.totalorder %s2351_s29, %s2347_s28  ;;  %s2939_s22 = smov (%p42_p0, %s2937_s22), 0 }
  0x48   : > { %2895 = sst [smem:[#allocation21_spill]] %s2939_s22  ;;  %p2591_p6 = por %p2871_p1, %p62_p2 }
  0x49   : > { %p2595_p9 = por %p82_p3, %p57_p13  ;;  %s44_s27 = ssub.s32 %s2379_s14, %s2939_s22 }
  0x4a   : > { %p240_p10 = scmp.eq.s32.totalorder %s2501_s16, 3  ;;  %s46_s19 = sor.u32 %s45_s25, %s44_s27 }
  0x4b   : > { %p73_p11 = scmp.eq.s32.totalorder %s44_s27, 0  ;;  %p47_p8 = scmp.eq.s32.totalorder %s46_s19, 0 }
  0x4c   : > { %p2605_p0 = por %p240_p10, %p56_p12  ;;  %p246_p13 = scmp.eq.s32.totalorder %s1759_s21, 3 }
  0x4d   : > { %s2610_s4 = scalar_select %p73_p11, %s2351_s29, %s75_s20  }
  0x4e   : > { %s2898_s2 = scalar_select %p2605_p0, 1, 0 }
  0x4f   : > { %2900 = sst [smem:[#allocation23_spill]] %s2610_s4  ;;  %p1994_p3 = scmp.lt.s32.totalorder %s2383_s15, 4 }
  0x50   : > { %2899 = sst [smem:[#allocation22_spill]] %s2898_s2  ;;  %s314_s23 = sand.u32 1, %s2363_s10  }
  0x51   : > { %s2613_s6 = scalar_select %p47_p8, %s2363_s10, %s49_s24  }
  0x52   : > { %s1766_s22 = sshll.u32 %s2379_s14, 1  ;;  %p2621_p1 = por %p246_p13, %p62_p2 }
  0x53   : > { %2901 = sst [smem:[#allocation24_spill]] %s2613_s6  ;;  %s1765_s19 = sshll.u32 %s314_s23, 3 }
  0x54   : > { %s2902_s27 = scalar_select %p2621_p1, 1, 0 }
  0x55   : > { %s323_s25 = sadd.s32 %s2375_s13, %s1766_s22  ;;  %s2903_s0 = sld [smem:[#allocation25_spill]] }
  0x56   : > { %s1767_s12 = sshll.u32 %s323_s25, 7  ;;  %s318_s4 = scalar_lea.vmem [#allocation3], %s1765_s19 }
  0x57   : > { %s327_s5 = sshll.u32 %s318_s4, 4  ;;  %p2631_p12 = pnand %p1994_p3, %p2575_p7  ;;  %s328_s5 = int_to_ptr.vmem [resolvable:$true] %s327_s5 }
  0x58   : > { %p2637_p2 = pnand %p1994_p3, %p2595_p9  ;;  %s334_s22 = sand.u32 1, %s2383_s15  }
  0x59   : > { %s315_s25 = scalar_lea.sflag [#allocation4], %s314_s23  ;;  %p2197_p10 = pneg %p2631_p12 }
  0x5a   : > { %s2208_s2 = scalar_lea.vmem %s328_s5, 128  ;;  %s2390_s3 = smov [#allocation3]  }
  0x5b   : > { %s325_s20 = scalar_lea.hbm %s2903_s0, %s1767_s12  ;;  %p2209_p11 = scmp.ne.s32.totalorder %s328_s5, %s2208_s2 }
  0x5c   : > { %s2213_s4 = sshll.u32 %s2390_s3, 4  ;;  %s2214_s4 = int_to_ptr.vmem [resolvable:$false] %s2213_s4 }
  0x5d   : > { %p2211_p8 = pnand %p2209_p11, %p2197_p10  ;;  %s2215_s12 = scalar_lea.vmem %s2214_s4, 256 }
  0x5e   : > { %p2216_p7 = scmp.lt.s32.totalorder %s328_s5, %s2214_s4  ;;  %p2217_p1 = scmp.lt.s32.totalorder %s2215_s12, %s2208_s2 }
  0x5f   : > { %p2212_p13 = pneg %p2211_p8 }
  0x60   : > { %p2218_p0 = por %p2217_p1, %p2216_p7 }
  0x62   : > { %p2219_p4 = pnand %p2218_p0, %p2212_p13 }
  0x64   : > { %2222 = shalt.err (!%p2219_p4)
}
  0x65   : > { %1983 = dma.hbm_to_vmem [thread:$0]  (!%p2631_p12), %s325_s20, 128, %s328_s5, %s315_s25  }
  0x66   : > { %s336_s23 = sand.u32 1, %s2351_s29   ;;  %s1810_s8 = sshll.u32 %s2379_s14, 8 }
  0x67   : > { %s1768_s26 = sshll.u32 %s336_s23, 4  ;;  %s344_s3 = scalar_lea.hbm %s2858_s1, %s1810_s8 }
  0x68   : > { %s338_s13 = scalar_lea.vmem [#allocation6], %s1768_s26  ;;  %s335_s2 = scalar_lea.sflag [#allocation7], %s334_s22 }
  0x69   : > { %s345_s6 = sshll.u32 %s338_s13, 4  ;;  %p2225_p1 = pneg %p2637_p2  ;;  %s346_s6 = int_to_ptr.vmem [resolvable:$true] %s345_s6 }
  0x6a   : > { %s2236_s4 = scalar_lea.vmem %s346_s6, 256  ;;  %s2391_s21 = smov [#allocation6]  }
  0x6b   : > { %p2237_p4 = scmp.ne.s32.totalorder %s346_s6, %s2236_s4  ;;  %s2241_s12 = sshll.u32 %s2391_s21, 4  ;;  %s2242_s12 = int_to_ptr.vmem [resolvable:$false] %s2241_s12 }
  0x6c   : > { %s2243_s5 = scalar_lea.vmem %s2242_s12, 512  ;;  %p2244_p3 = scmp.lt.s32.totalorder %s346_s6, %s2242_s12 }
  0x6d   : > { %p2239_p9 = pnand %p2237_p4, %p2225_p1  ;;  %p2245_p12 = scmp.lt.s32.totalorder %s2243_s5, %s2236_s4 }
  0x6f   : > { %p2240_p0 = pneg %p2239_p9  ;;  %p2246_p10 = por %p2245_p12, %p2244_p3 }
  0x71   : > { %p2247_p11 = pnand %p2246_p10, %p2240_p0 }
  0x73   : > { %2250 = shalt.err (!%p2247_p11)
}
  0x74   : > { %s2906_s0 = smov 8   ;;  %s2907_s13 = smov 128  }
  0x75   : > { %1986 = dma.hbm_to_vmem [thread:$0]  (!%p2637_p2), %s344_s3, 256, %s346_s6, %s335_s2, %s2907_s13, %s2907_s13, %s2906_s0  }
  0x76   : > { %357 = sbr.rel (%p2513_p5) target bundleno = 2176 (0x880), region = 52  ;;  %s2661_s20 = sand.u32 (!%p2513_p5), 1, %s2359_s9  }
  0x77   : > { %s1772_s22 = sshll.u32 (!%p2513_p5), %s2661_s20, 3  ;;  %s360_s25 = scalar_lea.sflag (!%p2513_p5), [#allocation4], %s2661_s20 }
  0x78   : > { %s2665_s23 = scalar_lea.vmem (!%p2513_p5), [#allocation3], %s1772_s22 }
  0x7b   : > { %2322 = dma.done.wait (%p2591_p6), %s360_s25, 128  }
  0x7c   : > { %2324 = vsyncadd (%p2591_p6), %s360_s25, 4294967168  ;;  %s368_s6 = sand.u32 1, %s2501_s16   ;;  %s370_s18 = sand.u32 1, %s2347_s28  }
  0x7d   : > { %s1773_s24 = sshll.u32 %s370_s18, 4  ;;  %s369_s26 = scalar_lea.sflag [#allocation7], %s368_s6 }
  0x7e   : > { %s372_s8 = scalar_lea.vmem [#allocation6], %s1773_s24  ;;  %p2908_p5 = scmp.ne.s32.totalorder %s2887_s17, 0 }
  0x80   : > { %2326 = dma.done.wait (%p2908_p5), %s369_s26, 256  }
  0x81   : > { %2328 = vsyncadd (%p2908_p5), %s369_s26, 4294967040  ;;  %p2909_p2 = scmp.eq.s32.totalorder %s2501_s16, 0 }
  0x83   : > { %2330 = dma.done.wait (%p2909_p2), [#allocation7], 512   ;;  %p2910_p8 = pmov %p2909_p2 }
  0x84   : > { %p2911_p6 = pmov %p2909_p2 }
  0x85   : > { %2332 = vsyncadd (%p2910_p8), [#allocation7], 4294966784 }
  0x86   : > { %2334 = dma.done.wait (%p2911_p6), [#allocation10], 1024   ;;  %p2912_p13 = pmov %p2909_p2 }
  0x87   : > { %s2685_s7 = scalar_lea.vmem [#allocation12], %s1772_s22  ;;  %p1778_p7 = scmp.ne.s32.totalorder %s2367_s11, 0 }
  0x88   : > { %2336 = vsyncadd (%p2912_p13), [#allocation10], 4294966272  ;;  %s2913_s19 = sld [smem:[#allocation29_spill]] (!%p1778_p7) }
  0x89   : > { %425 = sbr.rel (%p1778_p7) target bundleno = 349 (0x15d), region = 76 }
  0x8e   : > { %v431_v0 = vld [vmem:[#allocation9 + $0x18] sm:$0xff]  ;;  %v430_v1 = vld [vmem:[#allocation9 + $0x10] sm:$0xff]  ;;  %vm439_vm0 = vcmask 261120   ;;  %v429_v3 = vld [vmem:[#allocation9 + $0x8] sm:$0xff]  ;;  %vm521_vm1 = vcmask 523264  }
  0x8f   : > { %1854 = vmatprep.subr.mxu0 %v431_v0  ;;  %v426_v2 = vld [vmem:[%s372_s8] sm:$0xff]  ;;  %v427_v5 = vld [vmem:[%s372_s8 + $0x8] sm:$0xff] }
  0x90   : > { %1855 = vmatpush3.msra.mxu0 %v431_v0  ;;  %1862 = vmatprep.mubr.msk.f32.mxu0 %vm439_vm0, %v426_v2  ;;  %v428_v4 = vld [vmem:[#allocation9] sm:$0xff] }
  0x91   : > { %1856 = vmatprep.subr.mxu0 %v430_v1  ;;  %v1779_v6 = vld [vmem:[%s2913_s19] ss:$0 sm:$0xff] }
  0x92   : > { %1857 = vmatpush3.msra.mxu0 %v430_v1 }
  0x93   : > { %1858 = vmatprep.subr.mxu0 %v429_v3 }
  0x94   : > { %1859 = vmatpush3.msra.mxu0 %v429_v3 }
  0x95   : > { %1860 = vmatprep.subr.mxu0 %v428_v4 }
  0x96   : > { %1861 = vmatpush3.msra.mxu0 %v428_v4 }
  0x97   : > { %1863 = vmatmul.mubr.msk.f32.vlgmr.msra.gmra.mxu0 %vm439_vm0, %v427_v5 }
 0x157   : > { %v1864_v7 = vpop.f32.mrf.mxu0 }
 0x158   : > { %v518_v8 = vadd.f32 %v1864_v7, %v1779_v6 }
 0x159   : > { %v512_v9 = vpop.f32.mrf.mxu0 }
 0x15a   : > { %523 = vst.msk [vmem:[#allocation2 + $0x8] sm:$0xff] %vm521_vm1, %v518_v8  ;;  %v513_v10 = vadd.f32 %v1779_v6, %v512_v9 }
 0x15c   : > { %522 = vst.msk [vmem:[#allocation2] sm:$0xff] %vm521_vm1, %v513_v10 }
 0x15d PF: > { %v528_v11 = vld [vmem:[#allocation8 + $0x18] sm:$0xff]  ;;  %v2392_v12 = vmov 0.0   ;;  %v527_v13 = vld [vmem:[#allocation8 + $0x10] sm:$0xff]  ;;  %vm2393_vm2 = vmmov 0   ;;  %vm616_vm3 = vcmask 64512   ;;  %v526_v15 = vld [vmem:[#allocation8 + $0x8] sm:$0xff] }
 0x15e   : > { %1865 = vmatprep.subr.mxu0 %v2392_v12  ;;  %1873 = vmatprep.mubr.msk.f32.mxu0 %vm2393_vm2, %v2392_v12  ;;  %s2394_s3 = smov 120   ;;  %v525_v17 = vld [vmem:[#allocation8] sm:$0xff]  ;;  %v524_v18 = vld [vmem:[%s2665_s23] sm:$0xff]  ;;  %vm536_vm4 = vcmask 261120   ;;  %s2395_s2 = smov 96   ;;  %vm696_vm5 = vcmask 130048  }
 0x15f   : > { %1866 = vmatpush3.msra.mxu0 %v528_v11  ;;  %1876 = vmatprep.subr.mxu1 %v2392_v12  ;;  %s2914_s12 = sld [smem:[#allocation27_spill]]  ;;  %s2396_s5 = smov 88   ;;  %v612_v40 = vld [vmem:[#allocation11] sm:$0xff]  ;;  %v613_v47 = vld [vmem:[#allocation11 + $0x8] sm:$0xff] }
 0x160   : > { %1867 = vmatprep.subr.mxu0 %v2392_v12  ;;  %1880 = vmatprep.mubr.msk.f32.mxu1 %vm2393_vm2, %v2392_v12  ;;  %s2397_s0 = smov 112   ;;  %s2398_s13 = smov 104  }
 0x161   : > { %v2694_v14 = vld [vmem:[#allocation2 + $0x8] sm:$0xff]  ;;  %1868 = vmatpush3.msra.mxu0 %v527_v13  ;;  %s2399_s22 = smov 80   ;;  %s2400_s25 = smov 72  }
 0x162   : > { %791 = vrot.lane.b32.xlu0 %v2694_v14, %s2394_s3  ;;  %1877 = vmatpush3.xpose.msk.msra.mxu1 %vm616_vm3, %v2694_v14  ;;  %s2915_s23 = sld [smem:[#allocation18_spill]]  ;;  %s1622_s19 = sshll.u32 %s2685_s7, 4  ;;  %s1623_s19 = int_to_ptr.vmem [resolvable:$true] %s1622_s19 }
 0x163   : > { %v2701_v16 = vld [vmem:[#allocation2] sm:$0xff]  ;;  %1869 = vmatprep.subr.mxu0 %v2392_v12  ;;  %1878 = vmatprep.subr.mxu1 %v2392_v12  ;;  %s2916_s6 = sld [smem:[#allocation22_spill]] }
 0x164   : > { %1870 = vmatpush3.msra.mxu0 %v526_v15  ;;  %s2917_s16 = sld [smem:[#allocation31_spill]] }
 0x165   : > { %1871 = vmatprep.subr.mxu0 %v2392_v12  ;;  %v1782_v19 = vld [vmem:[%s2914_s12] ss:$0 sm:$0xff]  ;;  %s2918_s4 = sld [smem:[#allocation32_spill]]  ;;  %s1607_s12 = scalar_lea.sflag [#allocation5], %s2661_s20 }
 0x166   : > { %789 = vrot.lane.b32.xlu0 %v2701_v16, %s2394_s3  ;;  %1872 = vmatpush3.msra.mxu0 %v525_v17 }
 0x167   : > { %1879 = vmatpush3.xpose.msk.msra.mxu1 %vm616_vm3, %v2701_v16  ;;  %1874 = vmatmul.mubr.msk.f32.vlgmr.msra.gmra.mxu0 %vm536_vm4, %v524_v18 }
 0x168   : > { %1890 = vmatprep.subr.mxu1 %v2392_v12  ;;  %1883 = vmatprep.subr.mxu0 %v2392_v12  ;;  %s1806_s18 = sshll.u32 %s2915_s23, 1 }
 0x169   : > { %1887 = vmatprep.mubr.msk.f32.mxu0 %vm2393_vm2, %v2392_v12  ;;  %s1618_s24 = sadd.s32 %s2367_s11, %s1806_s18  ;;  %p2919_p4 = scmp.ne.s32.totalorder %s2916_s6, 0 }
 0x16a   : > { %708 = vrot.lane.b32.xlu0 %v2694_v14, %s2395_s2  ;;  %s1807_s17 = sshll.u32 %s1618_s24, 7  ;;  %s2401_s11 = smov [#allocation12]  }
 0x16b   : > { %s1620_s21 = scalar_lea.hbm %s2918_s4, %s1807_s17 }
 0x1d4   : > { %v792_v20 = vpop.permute.xlu0 %791 }
 0x1d8   : > { %v790_v24 = vpop.permute.xlu0 %789 }
 0x1dc   : > { %v709_v29 = vpop.permute.xlu0 %708 }
 0x1dd   : > { %1884 = vmatpush3.msra.mxu0 %v709_v29 }
 0x1de   : > { %1885 = vmatprep.subr.mxu0 %v2392_v12 }
 0x227   : > { %v606_v21 = vpop.f32.mrf.mxu0 }
 0x228   : > { %v607_v22 = vadd.f32 %v1782_v19, %v606_v21  ;;  %v614_v19 = vld [vmem:[#allocation11 + $0x10] sm:$0xff] }
 0x229   : > { %v1875_v23 = vpop.f32.mrf.mxu0 }
 0x22a   : > { %787 = vrot.lane.b32.xlu1 %v607_v22, %s2394_s3  ;;  %1881 = vmatmul.mubr.msk.f32.vlgmr.msra.gmra.mxu1 %vm616_vm3, %v607_v22 }
 0x22b   : > { %1891 = vmatpush3.xpose.msk.msra.mxu1 %vm616_vm3, %v792_v20  ;;  %1894 = vmatprep.mubr.msk.f32.mxu1 %vm2393_vm2, %v2392_v12 }
 0x22c   : > { %1892 = vmatprep.subr.mxu1 %v2392_v12 }
 0x22e   : > { %706 = vrot.lane.b32.xlu1 %v2701_v16, %s2395_s2 }
 0x22f   : > { %1893 = vmatpush3.xpose.msk.msra.mxu1 %vm616_vm3, %v790_v24 }
 0x230   : > { %1909 = vmatprep.subr.mxu1 %v2392_v12 }
 0x29c   : > { %v788_v25 = vpop.permute.xlu1 %787 }
 0x29d   : > { %1895 = vmatmul.mubr.msk.f32.vlgmr.msra.gmra.mxu1 %vm616_vm3, %v788_v25 }
 0x29e   : > { %1911 = vmatprep.mubr.msk.f32.mxu1 %vm2393_vm2, %v2392_v12  ;;  %1910 = vmatpush3.msra.mxu1 %v612_v40 }
 0x29f   : > { %1921 = vmatprep.subr.mxu1 %v2392_v12 }
 0x2a0   : > { %v707_v30 = vpop.permute.xlu1 %706 }
 0x2a1   : > { %1886 = vmatpush3.msra.mxu0 %v707_v30 }
 0x2a2   : > { %1897 = vmatprep.subr.mxu0 %v2392_v12 }
 0x2ea   : > { %v692_v26 = vpop.f32.mrf.mxu1 }
 0x2eb   : > { %v697_v27 = vsel %vm696_vm5, %v692_v26, -inf }
 0x2ec   : > { %698 = vmax.xlane.f32.xlu1 %v697_v27  ;;  %v1882_v28 = vpop.f32.mrf.mxu1 }
 0x2fd   : > { %880 = vrot.lane.b32.xlu1 %v2694_v14, %s2396_s5 }
 0x35d   : > { %v865_v31 = vpop.f32.mrf.mxu1 }
 0x35e   : > { %v869_v32 = vsel %vm696_vm5, %v865_v31, -inf }
 0x35f   : > { %870 = vmax.xlane.f32.xlu0 %v869_v32  ;;  %v1896_v33 = vpop.f32.mrf.mxu1 }
 0x375   : > { %v699_v34 = vpop.xlane.xlu1 %698  ;;  %878 = vrot.lane.b32.xlu0 %v2701_v16, %s2396_s5  ;;  %s2251_s5 = scalar_lea.vmem %s1623_s19, 128 }
 0x376   : > { %v700_v35 = vsub.f32 %v692_v26, %v699_v34  ;;  %p2252_p1 = scmp.ne.s32.totalorder %s1623_s19, %s2251_s5 }
 0x378   : > { %v701_v36 = vmul.f32 1.442695, %v700_v35  ;;  %p2253_p9 = pnand %p2252_p1, %p2919_p4 }
 0x379   : > { %1109 = vrot.lane.b32.xlu0 %v2694_v14, %s2397_s0  ;;  %v881_v37 = vpop.permute.xlu1 %880 }
 0x37a   : > { %2101 = vpow2.f32 %v701_v36  ;;  %p2254_p0 = pneg %p2253_p9 }
 0x37d   : > { %1107 = vrot.lane.b32.xlu0 %v2701_v16, %s2397_s0 }
 0x381   : > { %1105 = vrot.lane.b32.xlu0 %v607_v22, %s2397_s0  ;;  %s2255_s0 = sshll.u32 %s2401_s11, 4  ;;  %s2256_s0 = int_to_ptr.vmem [resolvable:$false] %s2255_s0 }
 0x382   : > { %p2258_p3 = scmp.lt.s32.totalorder %s1623_s19, %s2256_s0 }
 0x385   : > { %1355 = vrot.lane.b32.xlu0 %v2694_v14, %s2398_s13 }
 0x387   : > { %v2102_v38 = vpop.eup %2101 }
 0x388   : > { %1888 = vmatmul.mubr.msk.f32.vlgmr.msra.gmra.mxu0 %vm696_vm5, %v2102_v38  ;;  %v703_v39 = vsel %vm696_vm5, %v2102_v38, 0.0 }
 0x389   : > { %1353 = vrot.lane.b32.xlu0 %v2701_v16, %s2398_s13  ;;  %1898 = vmatpush3.msra.mxu0 %v881_v37 }
 0x38a   : > { %1899 = vmatprep.subr.mxu0 %v2392_v12  ;;  %1901 = vmatprep.mubr.msk.f32.mxu0 %vm2393_vm2, %v2392_v12 }
 0x38d   : > { %1351 = vrot.lane.b32.xlu0 %v607_v22, %s2398_s13  ;;  %s2257_s13 = scalar_lea.vmem %s2256_s0, 256 }
 0x38e   : > { %p2259_p12 = scmp.lt.s32.totalorder %s2257_s13, %s2251_s5 }
 0x390   : > { %p2260_p10 = por %p2259_p12, %p2258_p3 }
 0x392   : > { %p2261_p11 = pnand %p2260_p10, %p2254_p0 }
 0x3ac   : > { %704 = vadd.xlane.f32.xlu0 %v703_v39 }
 0x3c2   : > { %1444 = vrot.lane.b32.xlu0 %v2694_v14, %s2400_s25 }
 0x3e8   : > { %v871_v41 = vpop.xlane.xlu0 %870 }
 0x3e9   : > { %v872_v42 = vsub.f32 %v865_v31, %v871_v41  ;;  %v615_v31 = vld [vmem:[#allocation11 + $0x18] sm:$0xff]  ;;  %v1804_v41 = vld [vmem:[%s2917_s16] ss:$0 sm:$0xff] }
 0x3eb   : > { %v873_v43 = vmul.f32 1.442695, %v872_v42 }
 0x3ec   : > { %v879_v44 = vpop.permute.xlu0 %878 }
 0x3ed   : > { %2103 = vpow2.f32 %v873_v43  ;;  %1900 = vmatpush3.msra.mxu0 %v879_v44 }
 0x3ee   : > { %1904 = vmatprep.subr.mxu0 %v2392_v12 }
 0x3f0   : > { %v1110_v48 = vpop.permute.xlu0 %1109 }
 0x3f4   : > { %v1108_v49 = vpop.permute.xlu0 %1107 }
 0x3f8   : > { %v1106_v50 = vpop.permute.xlu0 %1105 }
 0x3fa   : > { %v2104_v45 = vpop.eup %2103 }
 0x3fb   : > { %1902 = vmatmul.mubr.msk.f32.vlgmr.msra.gmra.mxu0 %vm696_vm5, %v2104_v45  ;;  %v875_v46 = vsel %vm696_vm5, %v2104_v45, 0.0 }
 0x3fc   : > { %876 = vadd.xlane.f32.xlu1 %v875_v46  ;;  %1906 = vmatprep.mubr.msk.f32.mxu0 %vm2393_vm2, %v2392_v12  ;;  %v1356_v51 = vpop.permute.xlu0 %1355 }
 0x3fd   : > { %1905 = vmatpush3.msra.mxu0 %v613_v47 }
 0x3fe   : > { %1914 = vmatprep.subr.mxu0 %v2392_v12 }
 0x400   : > { %v1354_v52 = vpop.permute.xlu0 %1353 }
 0x404   : > { %v1352_v53 = vpop.permute.xlu0 %1351 }
 0x40d   : > { %1198 = vrot.lane.b32.xlu1 %v2694_v14, %s2399_s22 }
 0x435   : > { %v705_v54 = vpop.xlane.xlu0 %704 }
 0x436   : > { %2105 = vrcp.f32 %v705_v54 }
 0x439   : > { %v1445_v25 = vpop.permute.xlu0 %1444 }
 0x443   : > { %v2106_v55 = vpop.eup %2105 }
 0x448   : > { %v781_v56 = vpop.f32.mrf.mxu0 }
 0x449   : > { %v786_v57 = vmul.f32 %v2106_v55, %v781_v56 }
 0x44a   : > { %v1889_v58 = vpop.f32.mrf.mxu0 }
 0x44b   : > { %1912 = vmatmul.mubr.msk.f32.vlgmr.msra.gmra.mxu1 %vm616_vm3, %v786_v57 }
 0x44c   : > { %1925 = vmatprep.mubr.msk.f32.mxu1 %vm2393_vm2, %v2392_v12 }
 0x485   : > { %v877_v59 = vpop.xlane.xlu1 %876 }
 0x486   : > { %2107 = vrcp.f32 %v877_v59 }
 0x489   : > { %v1199_v2 = vpop.permute.xlu1 %1198 }
 0x48a   : > { %1922 = vmatpush3.msra.mxu1 %v1199_v2 }
 0x48b   : > { %1923 = vmatprep.subr.mxu1 %v2392_v12 }
 0x493   : > { %v2108_v60 = vpop.eup %2107 }
 0x4bb   : > { %v953_v61 = vpop.f32.mrf.mxu0 }
 0x4bc   : > { %v958_v62 = vmul.f32 %v2108_v60, %v953_v61 }
 0x4bd   : > { %v1903_v63 = vpop.f32.mrf.mxu0 }
 0x4be   : > { %1907 = vmatmul.mubr.msk.f32.vlgmr.msra.gmra.mxu0 %vm616_vm3, %v958_v62 }
 0x4bf   : > { %1915 = vmatpush3.xpose.msk.msra.mxu0 %vm616_vm3, %v1110_v48  ;;  %1918 = vmatprep.mubr.msk.f32.mxu0 %vm2393_vm2, %v2392_v12 }
 0x4c0   : > { %1916 = vmatprep.subr.mxu0 %v2392_v12 }
 0x4c3   : > { %1917 = vmatpush3.xpose.msk.msra.mxu0 %vm616_vm3, %v1108_v49 }
 0x4c4   : > { %1933 = vmatprep.subr.mxu0 %v2392_v12 }
 0x4c6   : > { %1919 = vmatmul.mubr.msk.f32.vlgmr.msra.gmra.mxu0 %vm616_vm3, %v1106_v50 }
 0x4c7   : > { %1934 = vmatpush3.xpose.msk.msra.mxu0 %vm616_vm3, %v1356_v51  ;;  %1937 = vmatprep.mubr.msk.f32.mxu0 %vm2393_vm2, %v2392_v12 }
 0x4c8   : > { %1935 = vmatprep.subr.mxu0 %v2392_v12 }
 0x4cb   : > { %1936 = vmatpush3.xpose.msk.msra.mxu0 %vm616_vm3, %v1354_v52 }
 0x4ce   : > { %1938 = vmatmul.mubr.msk.f32.vlgmr.msra.gmra.mxu0 %vm616_vm3, %v1352_v53 }
 0x50b   : > { %v1101_v0 = vpop.f32.mrf.mxu1 }
 0x50d   : > { %v1913_v1 = vpop.f32.mrf.mxu1 }
 0x57e   : > { %v1028_v3 = vpop.f32.mrf.mxu0 }
 0x57f   : > { %v1102_v33 = vadd.f32 %v1101_v0, %v1028_v3 }
 0x580   : > { %v1908_v4 = vpop.f32.mrf.mxu0 }
 0x586   : > { %v1183_v5 = vpop.f32.mrf.mxu0 }
 0x587   : > { %v1187_v6 = vsel %vm696_vm5, %v1183_v5, -inf }
 0x588   : > { %1188 = vmax.xlane.f32.xlu1 %v1187_v6  ;;  %v1920_v7 = vpop.f32.mrf.mxu0 }
 0x58e   : > { %v1429_v8 = vpop.f32.mrf.mxu0 }
 0x58f   : > { %v1433_v10 = vsel %vm696_vm5, %v1429_v8, -inf }
 0x590   : > { %v1939_v9 = vpop.f32.mrf.mxu0 }
 0x599   : > { %1196 = vrot.lane.b32.xlu1 %v2701_v16, %s2399_s22 }
 0x5bd   : > { %1434 = vmax.xlane.f32.xlu1 %v1433_v10 }
 0x611   : > { %v1189_v11 = vpop.xlane.xlu1 %1188 }
 0x612   : > { %v1190_v13 = vsub.f32 %v1183_v5, %v1189_v11 }
 0x614   : > { %v1191_v14 = vmul.f32 1.442695, %v1190_v13 }
 0x615   : > { %v1197_v15 = vpop.permute.xlu1 %1196 }
 0x616   : > { %2109 = vpow2.f32 %v1191_v14  ;;  %1924 = vmatpush3.msra.mxu1 %v1197_v15 }
 0x617   : > { %1928 = vmatprep.subr.mxu1 %v2392_v12 }
 0x623   : > { %v2110_v17 = vpop.eup %2109 }
 0x624   : > { %1926 = vmatmul.mubr.msk.f32.vlgmr.msra.gmra.mxu1 %vm696_vm5, %v2110_v17  ;;  %v1193_v18 = vsel %vm696_vm5, %v2110_v17, 0.0 }
 0x625   : > { %1194 = vadd.xlane.f32.xlu0 %v1193_v18  ;;  %1930 = vmatprep.mubr.msk.f32.mxu1 %vm2393_vm2, %v2392_v12 }
 0x626   : > { %1929 = vmatpush3.msra.mxu1 %v614_v19 }
 0x627   : > { %1940 = vmatprep.subr.mxu1 %v2392_v12 }
 0x63b   : > { %1442 = vrot.lane.b32.xlu0 %v2701_v16, %s2400_s25 }
 0x646   : > { %v1435_v20 = vpop.xlane.xlu1 %1434 }
 0x647   : > { %v1436_v21 = vsub.f32 %v1429_v8, %v1435_v20 }
 0x649   : > { %v1437_v22 = vmul.f32 1.442695, %v1436_v21 }
 0x64b   : > { %2111 = vpow2.f32 %v1437_v22 }
 0x658   : > { %v2112_v23 = vpop.eup %2111 }
 0x659   : > { %v1439_v24 = vsel %vm696_vm5, %v2112_v23, 0.0 }
 0x65a   : > { %1440 = vadd.xlane.f32.xlu0 %v1439_v24 }
 0x6ae   : > { %v1195_v26 = vpop.xlane.xlu0 %1194 }
 0x6af   : > { %2113 = vrcp.f32 %v1195_v26 }
 0x6b2   : > { %v1443_v16 = vpop.permute.xlu0 %1442 }
 0x6bc   : > { %v2114_v27 = vpop.eup %2113 }
 0x6e3   : > { %v1441_v32 = vpop.xlane.xlu0 %1440 }
 0x6e4   : > { %v1271_v28 = vpop.f32.mrf.mxu1  ;;  %2115 = vrcp.f32 %v1441_v32 }
 0x6e5   : > { %v1276_v29 = vmul.f32 %v2114_v27, %v1271_v28 }
 0x6e6   : > { %v1927_v30 = vpop.f32.mrf.mxu1 }
 0x6e7   : > { %1931 = vmatmul.mubr.msk.f32.vlgmr.msra.gmra.mxu1 %vm616_vm3, %v1276_v29 }
 0x6e8   : > { %1941 = vmatpush3.msra.mxu1 %v1445_v25  ;;  %1944 = vmatprep.mubr.msk.f32.mxu1 %vm2393_vm2, %v2392_v12 }
 0x6e9   : > { %1942 = vmatprep.subr.mxu1 %v2392_v12 }
 0x6ea   : > { %1943 = vmatpush3.msra.mxu1 %v1443_v16 }
 0x6eb   : > { %1945 = vmatmul.mubr.msk.f32.vlgmr.msra.gmra.mxu1 %vm696_vm5, %v2112_v23  ;;  %1947 = vmatprep.subr.mxu1 %v2392_v12 }
 0x6ec   : > { %1949 = vmatprep.mubr.msk.f32.mxu1 %vm2393_vm2, %v2392_v12  ;;  %1948 = vmatpush3.msra.mxu1 %v615_v31 }
 0x6f1   : > { %v2116_v37 = vpop.eup %2115 }
 0x7a7   : > { %v1346_v34 = vpop.f32.mrf.mxu1 }
 0x7a8   : > { %v1350_v35 = vadd.f32 %v1346_v34, %v1102_v33 }
 0x7a9   : > { %v1932_v36 = vpop.f32.mrf.mxu1 }
 0x7ab   : > { %v1517_v38 = vpop.f32.mrf.mxu1 }
 0x7ac   : > { %v1522_v39 = vmul.f32 %v2116_v37, %v1517_v38 }
 0x7ad   : > { %v1946_v40 = vpop.f32.mrf.mxu1 }
 0x7ae   : > { %1950 = vmatmul.mubr.msk.f32.vlgmr.msra.gmra.mxu1 %vm616_vm3, %v1522_v39 }
 0x86e   : > { %v1592_v12 = vpop.f32.mrf.mxu1 }
 0x86f   : > { %v1596_v42 = vadd.f32 %v1592_v12, %v1350_v35 }
 0x870   : > { %v1951_v43 = vpop.f32.mrf.mxu1 }
 0x871   : > { %v1604_v44 = vadd.f32 %v1804_v41, %v1596_v42 }
 0x873   : > { %1605 = vst.msk [vmem:[%s2685_s7] sm:$0xff] %vm536_vm4, %v1604_v44 }
 0x874   : > { %2264 = shalt.err (!%p2261_p11)
}
 0x875   : > { %s2265_s22 = scalar_lea.hbm %s1620_s21, 128  ;;  %s2269_s25 = scalar_lea.hbm %s2918_s4, 512 }
 0x876   : > { %p2266_p5 = scmp.ne.s32.totalorder %s1620_s21, %s2265_s22  ;;  %p2270_p6 = scmp.lt.s32.totalorder %s1620_s21, %s2918_s4 }
 0x877   : > { %p2271_p13 = scmp.lt.s32.totalorder %s2269_s25, %s2265_s22 }
 0x878   : > { %p2267_p2 = pnand %p2266_p5, %p2919_p4 }
 0x879   : > { %p2272_p7 = por %p2271_p13, %p2270_p6 }
 0x87a   : > { %p2268_p8 = pneg %p2267_p2 }
 0x87c   : > { %p2273_p1 = pnand %p2272_p7, %p2268_p8 }
 0x87e   : > { %2276 = shalt.err (!%p2273_p1)
}
 0x87f   : > { %1968 = dma.vmem_to_hbm [thread:$0]  (%p2919_p4), %s1623_s19, 128, %s1620_s21, %s1607_s12  }
 0x880 PF: > { %p1998_p9 = scmp.ge.s32.totalorder %s2383_s15, 2  ;;  %s1634_s24 = sand.u32 1, %s2355_s30  }
 0x881   : > { %p2920_p0 = scmp.ne.s32.totalorder %s2902_s27, 0  ;;  %s1635_s26 = scalar_lea.sflag [#allocation5], %s1634_s24 }
 0x883   : > { %p1988_p3 = pnand %p1998_p9, %p2920_p0 }
 0x885   : > { %p1989_p12 = pneg %p1988_p3 }
 0x887   : > { %2338 = dma.done.wait (%p1989_p12), %s1635_s26, 128  }
 0x888   : > { %2340 = vsyncadd (%p1989_p12), %s1635_s26, 4294967168  ;;  %s28_s15 = sadd.s32 1, %s2383_s15   ;;  %s2921_s8 = sld [smem:[#allocation23_spill]] }
 0x889   : > { %p25_p10 = scmp.ge.s32.totalorder %s28_s15, 6   ;;  %s2922_s6 = sld [smem:[#allocation24_spill]] }
 0x88a   : > { %s2923_s11 = sld [smem:[#allocation19_spill]]  ;;  %s2926_s27 = smov %s2347_s28 }
 0x88b   : > { %s2924_s13 = sld [smem:[#allocation20_spill]]  ;;  %s2927_s28 = smov %s2351_s29 }
 0x88c   : > { %s2925_s16 = sld [smem:[#allocation21_spill]]  ;;  %s2929_s30 = smov %s2359_s9 }
 0x88d   : > { %s2930_s9 = smov %s2363_s10  ;;  %s2932_s12 = smov %s2379_s14 }
 0x88e   : > { %s2928_s29 = smov %s2921_s8  ;;  %27 = sbr.rel (!%p25_p10) target bundleno = 21 (0x15), region = 126 }
 0x88f   : > { %s2931_s10 = smov %s2922_s6 }
 0x892   : > { %s2933_s14 = smov %s2925_s16 }
 0x893   :  { %1640 = vsyncpa [#allocation4], 1 }
 0x894   :  { %1642 = vsyncpa [#allocation4 + $0x1], 1 }
 0x895   :  { %1643 = vsyncpa [#allocation7], 1 }
 0x896   :  { %1645 = vsyncpa [#allocation7 + $0x1], 1 }
 0x897   :  { %1646 = vsyncpa [#allocation10], 1 }
 0x898   :  { %1647 = vsyncpa [#allocation5], 1 }
 0x899   :  { %1649 = vsyncpa [#allocation5 + $0x1], 1 }

</bundles_post_ra>
